<compile_context>
chip_gen: v5e
topology: v5e:2x2
jax: 0.10.0
libtpu: 0.0.40
codegen_flags: <defaults>
</compile_context>

<pallas_src>
import math
from functools import partial

import jax
import jax.numpy as jnp
import numpy as np
from jax.experimental import pallas as pl
from jax.experimental.pallas import tpu as pltpu


def _full_spec(shape):
    # whole-array block, grid=(1,)
    return pl.BlockSpec(shape, lambda i: (0,) * len(shape))


def _round_up(v, m):
    return ((v + m - 1) // m) * m


# ---------------------------------------------------------------------------
# Fused GCN stack: out = concat_i( tanh(A_norm @ (H_{i-1} @ W_i) + b_i) ),
# lane-padded to a multiple of 128 columns.  One pallas_call, A_norm resident.
# ---------------------------------------------------------------------------
def gcn_stack_kernel(*refs, n_layers, d_pad):
    a_ref, x_ref = refs[0], refs[1]
    o_ref = refs[-1]
    a = a_ref[...]                    # load A_norm once, reuse for every layer
    h = x_ref[...]
    outs = []
    d_total = 0
    for i in range(n_layers):
        w_ref = refs[2 + 2 * i]
        b_ref = refs[3 + 2 * i]
        xw = jnp.dot(h, w_ref[...], preferred_element_type=jnp.float32)
        h = jnp.tanh(jnp.dot(a, xw, preferred_element_type=jnp.float32)
                     + b_ref[...])
        outs.append(h)
        d_total += h.shape[-1]
    if d_pad > d_total:               # zero lanes so the store is lane-dense
        outs.append(jnp.zeros((a.shape[0], d_pad - d_total), jnp.float32))
    o_ref[...] = outs[0] if len(outs) == 1 else jnp.concatenate(outs, axis=-1)


def gcn_stack(a_norm, x, gcn_params):
    # TODO(synk): for large N, tile A_norm with a real BlockSpec grid and use
    #             bf16 MXU operands; at this toy size whole-array f32 is best.
    n = a_norm.shape[0]
    n_pad = _round_up(n, 8)                       # sublane-dense output rows
    d_total = int(sum(w.shape[1] for (w, _) in gcn_params))
    d_pad = _round_up(d_total, 128)               # lane-dense output cols

    # Pad rows: padded A columns are zero, so real rows never see padded rows.
    a_p = jnp.pad(a_norm, ((0, n_pad - n), (0, n_pad - n)))
    x_p = jnp.pad(x, ((0, n_pad - n), (0, 0)))

    flat = []
    for (w, b) in gcn_params:
        flat += [w, b]
    args = (a_p, x_p, *flat)
    out = pl.pallas_call(
        partial(gcn_stack_kernel, n_layers=len(gcn_params), d_pad=d_pad),
        grid=(1,),
        in_specs=[_full_spec(a.shape) for a in args],
        out_specs=_full_spec((n_pad, d_pad)),
        out_shape=jax.ShapeDtypeStruct((n_pad, d_pad), jnp.float32),
        compiler_params=pltpu.CompilerParams(dimension_semantics=("arbitrary",)),
    )(*args)
    # keep lane padding (reused by the head); drop the padded (garbage) rows
    return out[:n], d_total


# ---------------------------------------------------------------------------
# Fused head: conv1 -> relu -> maxpool1d(2,2) -> conv2 -> relu -> flatten
#             -> Linear -> relu -> Linear        (dropout(0.5) = eval identity)
#
# Input row layout (prepared by the wrapper):
#   rows [0 .. B*half_k)       : pooled node 2r   of graph b, at row r*B + b
#   rows [B*half_k .. B*k)     : pooled node 2r+1 of graph b, at row r*B + b
# Time-major (r outer, b inner) keeps every conv window / time slice a
# contiguous sublane slice across all graphs simultaneously.
# ---------------------------------------------------------------------------
def head_kernel(pooled_ref, w1_ref, b1_ref, w2_ref, b2_ref,
                w3_ref, b3_ref, w4_ref, b4_ref, o_ref,
                *, B, k, kw2, c1, c2):
    half_k = k // 2
    bh = B * half_k
    l_out = half_k - kw2 + 1

    # conv1 (Conv1d(1, C1, D, stride=D)) == per-sorted-node matmul, + relu
    h1 = jnp.dot(pooled_ref[...], w1_ref[...], preferred_element_type=jnp.float32)
    h1 = jnp.maximum(h1 + b1_ref[...], 0.0)                     # [B*k, C1]

    # maxpool1d(2, 2): pool pairs live in the two contiguous halves
    h1p = jnp.maximum(h1[:bh, :], h1[bh:, :])                   # [B*half_k, C1]

    # conv2 (Conv1d(C1, C2, kw2, 1)) as kw2 accumulated matmuls (no im2col)
    acc = jnp.dot(h1p[:l_out * B, :], w2_ref[0:c1, :],
                  preferred_element_type=jnp.float32)
    for j in range(1, kw2):
        acc = acc + jnp.dot(h1p[j * B:j * B + l_out * B, :],
                            w2_ref[j * c1:(j + 1) * c1, :],
                            preferred_element_type=jnp.float32)
    h2 = jnp.maximum(acc + b2_ref[...], 0.0)                    # [l_out*B, C2]

    # flatten + Linear as l_out accumulated matmuls (w3 rows pre-permuted to
    # the kernel's (t, c) order to match PyTorch's channel-major view(B, -1))
    h3 = jnp.dot(h2[:B, :], w3_ref[0:c2, :], preferred_element_type=jnp.float32)
    for t in range(1, l_out):
        h3 = h3 + jnp.dot(h2[t * B:(t + 1) * B, :],
                          w3_ref[t * c2:(t + 1) * c2, :],
                          preferred_element_type=jnp.float32)
    h3 = jnp.maximum(h3 + b3_ref[...], 0.0)                     # [B, mlp]

    # final Linear; output lane-padded to 128 cols (real logit in column 0)
    o_ref[...] = (jnp.dot(h3, w4_ref[...], preferred_element_type=jnp.float32)
                  + b4_ref[...])                                # [B, 128]


def dgcnn_head(pooled3d, params, *, B, k, kw2=5, out_pad=128):
    D = pooled3d.shape[-1]            # already lane-padded by gcn_stack
    assert k % 2 == 0, "maxpool1d(2,2) pairs must not straddle graph boundaries"
    half_k = k // 2
    l_out = half_k - kw2 + 1
    assert l_out >= 1
    c1 = params["w1"].shape[1]
    c2 = params["w2"].shape[1]
    assert params["w3"].shape[0] == l_out * c2
    assert params["w1"].shape[0] <= D

    # De-interleave pool pairs and go time-major: [parity, r, b] row order.
    ph = pooled3d.reshape(B, half_k, 2, D).transpose(2, 1, 0, 3).reshape(B * k, D)

    # Pad conv1 weight rows up to the (padded) contraction dim; zero rows match
    # the zero padding lanes of the pooled features.
    w1 = jnp.pad(params["w1"], ((0, D - params["w1"].shape[0]), (0, 0)))

    # Lane-pad the final output to 128 columns (unmasked store path).
    w4 = jnp.pad(params["w4"], ((0, 0), (0, out_pad - params["w4"].shape[1])))
    b4 = jnp.pad(params["b4"], ((0, 0), (0, out_pad - params["b4"].shape[1])))

    args = (ph, w1, params["b1"], params["w2"], params["b2"],
            params["w3"], params["b3"], w4, b4)
    out = pl.pallas_call(
        partial(head_kernel, B=B, k=k, kw2=kw2, c1=c1, c2=c2),
        grid=(1,),
        in_specs=[_full_spec(a.shape) for a in args],
        out_specs=_full_spec((B, out_pad)),
        out_shape=jax.ShapeDtypeStruct((B, out_pad), jnp.float32),
        compiler_params=pltpu.CompilerParams(dimension_semantics=("arbitrary",)),
    )(*args)
    return out[:, :1]                                            # [B, 1]


# ---------------------------------------------------------------------------
# SortAggregation (PyG global_sort_pool semantics) -- plain-JAX glue.
# TODO(synk): data-dependent per-graph descending sort has no clean Pallas
#             equivalent; implemented with jnp.argsort outside the kernels.
# TODO(synk): tie order under stable argsort(-key) may differ from
#             torch.sort(descending=True) when last-channel values tie.
# ---------------------------------------------------------------------------
def sort_pool(x, batch, *, B, k, node_counts, key_col):
    N, D = x.shape
    n_max = int(max(node_counts))
    counts = jnp.asarray(np.asarray(node_counts, np.int32))
    offsets = np.concatenate([[0], np.cumsum(node_counts)[:-1]]).astype(np.int32)
    pos = jnp.arange(N, dtype=jnp.int32) - jnp.asarray(offsets)[batch]

    dense = jnp.zeros((B, n_max, D), x.dtype).at[batch, pos].set(x)
    valid = jnp.arange(n_max, dtype=jnp.int32)[None, :] < counts[:, None]  # [B,n_max]

    # sort key = last REAL feature channel (lane padding is ignored)
    key = jnp.where(valid, dense[:, :, key_col], -jnp.inf)   # invalid nodes sort last
    order = jnp.argsort(-key, axis=1)                         # descending
    dense = jnp.take_along_axis(dense, order[:, :, None], axis=1)
    valid = jnp.take_along_axis(valid, order, axis=1)

    if n_max >= k:
        dense, valid = dense[:, :k], valid[:, :k]
    else:
        dense = jnp.pad(dense, ((0, 0), (0, k - n_max), (0, 0)))
        valid = jnp.pad(valid, ((0, 0), (0, k - n_max)))
    return jnp.where(valid[:, :, None], dense, 0.0)           # [B, k, D]


# ---------------------------------------------------------------------------
# Parameters (deterministic, synthetic)
# ---------------------------------------------------------------------------
def init_params(key, num_features, hidden, num_layers, k):
    c1, c2, kw2, mlp_ch = 16, 32, 5, 128
    D = hidden * num_layers + 1
    half_k = k // 2
    l_out = half_k - kw2 + 1
    dense_dim = l_out * c2

    dims = ([(num_features, hidden)]
            + [(hidden, hidden)] * (num_layers - 1)
            + [(hidden, 1)])
    params = {"gcn": []}
    for (fi, fo) in dims:
        key, kw_, kb_ = jax.random.split(key, 3)
        w = jax.random.normal(kw_, (fi, fo), jnp.float32) / np.sqrt(fi)
        b = jax.random.normal(kb_, (1, fo), jnp.float32) * 0.01
        params["gcn"].append((w, b))

    key, k1, k2, k3, k4 = jax.random.split(key, 5)
    params["w1"] = jax.random.normal(k1, (D, c1), jnp.float32) / np.sqrt(D)
    params["b1"] = jnp.zeros((1, c1), jnp.float32)
    params["w2"] = jax.random.normal(k2, (kw2 * c1, c2), jnp.float32) / np.sqrt(kw2 * c1)
    params["b2"] = jnp.zeros((1, c2), jnp.float32)
    w3 = jax.random.normal(k3, (dense_dim, mlp_ch), jnp.float32) / np.sqrt(dense_dim)
    # w3 canonical rows follow PyTorch's channel-major flatten (c*L_out + t);
    # permute to the kernel's natural (t*C2 + c) accumulation order.
    r = np.arange(dense_dim)
    perm = (r % c2) * l_out + (r // c2)
    params["w3"] = w3[perm]
    params["b3"] = jnp.zeros((1, mlp_ch), jnp.float32)
    params["w4"] = jax.random.normal(k4, (mlp_ch, 1), jnp.float32) / np.sqrt(mlp_ch)
    params["b4"] = jnp.zeros((1, 1), jnp.float32)
    return params


def dgcnn_forward(x, a_norm, batch, params, *, B, k, node_counts):
    feat, d_real = gcn_stack(a_norm, x, params["gcn"])    # one fused Pallas call
    pooled3d = sort_pool(feat, batch, B=B, k=k, node_counts=node_counts,
                         key_col=d_real - 1)
    return dgcnn_head(pooled3d, params, B=B, k=k, kw2=5)  # fused Pallas head


if __name__ == "__main__":
    key = jax.random.PRNGKey(0)

    # synthetic batched-graph input
    node_counts = [12, 16]
    B = len(node_counts)
    N = int(sum(node_counts))
    num_features = 4
    hidden = 32
    num_layers = 2

    # k exactly as DGCNN.__init__ computes it for k=0.6
    sorted_nodes = sorted(node_counts)
    kk = sorted_nodes[int(math.ceil(0.6 * len(sorted_nodes))) - 1]
    kk = int(max(10, kk))                       # -> 16 here

    # ring graph inside each example, symmetric edges
    src, dst, off = [], [], 0
    for n in node_counts:
        for i in range(n):
            j = (i + 1) % n
            src += [off + i, off + j]
            dst += [off + j, off + i]
        off += n
    src = np.asarray(src)
    dst = np.asarray(dst)

    # GCNConv normalization: D^{-1/2} (A + I) D^{-1/2}
    A = np.zeros((N, N), np.float32)
    A[src, dst] = 1.0
    A = A + np.eye(N, dtype=np.float32)
    deg = A.sum(axis=1)
    dinv = 1.0 / np.sqrt(deg)
    a_norm = jnp.asarray(dinv[:, None] * A * dinv[None, :])

    batch = jnp.asarray(np.repeat(np.arange(B), node_counts).astype(np.int32))
    key, kx = jax.random.split(key)
    x = jax.random.normal(kx, (N, num_features), dtype=jnp.float32)

    params = init_params(key, num_features, hidden, num_layers, kk)

    out = dgcnn_forward(x, a_norm, batch, params, B=B, k=kk,
                        node_counts=node_counts)
    out = jax.block_until_ready(out)
    assert out.shape == (B, 1) and out.dtype == jnp.float32
    assert bool(jnp.all(jnp.isfinite(out)))
    print("KERNEL_OK")
</pallas_src>

<mosaic_0001>
module attributes {stable_mosaic.version = 11 : i64} {
  func.func @gcn_stack_kernel(%arg0: i32, %arg1: memref<32x32xf32, #tpu.memory_space<vmem>>, %arg2: memref<32x4xf32, #tpu.memory_space<vmem>>, %arg3: memref<4x32xf32, #tpu.memory_space<vmem>>, %arg4: memref<1x32xf32, #tpu.memory_space<vmem>>, %arg5: memref<32x32xf32, #tpu.memory_space<vmem>>, %arg6: memref<1x32xf32, #tpu.memory_space<vmem>>, %arg7: memref<32x1xf32, #tpu.memory_space<vmem>>, %arg8: memref<1x1xf32, #tpu.memory_space<vmem>>, %arg9: memref<32x128xf32, #tpu.memory_space<vmem>>) attributes {dimension_semantics = [#tpu.dimension_semantics<arbitrary>], iteration_bounds = array<i64: 1>, scalar_prefetch = 0 : i64, scratch_operands = 0 : i64, tpu.core_type = #tpu.core_type<tc>, window_params = [{pipeline_mode = #tpu.pipeline_mode<synchronous>, transform_indices = @transform_0, window_bounds = array<i64: 32, 32>}, {pipeline_mode = #tpu.pipeline_mode<synchronous>, transform_indices = @transform_1, window_bounds = array<i64: 32, 4>}, {pipeline_mode = #tpu.pipeline_mode<synchronous>, transform_indices = @transform_2, window_bounds = array<i64: 4, 32>}, {pipeline_mode = #tpu.pipeline_mode<synchronous>, transform_indices = @transform_3, window_bounds = array<i64: 1, 32>}, {pipeline_mode = #tpu.pipeline_mode<synchronous>, transform_indices = @transform_4, window_bounds = array<i64: 32, 32>}, {pipeline_mode = #tpu.pipeline_mode<synchronous>, transform_indices = @transform_5, window_bounds = array<i64: 1, 32>}, {pipeline_mode = #tpu.pipeline_mode<synchronous>, transform_indices = @transform_6, window_bounds = array<i64: 32, 1>}, {pipeline_mode = #tpu.pipeline_mode<synchronous>, transform_indices = @transform_7, window_bounds = array<i64: 1, 1>}, {pipeline_mode = #tpu.pipeline_mode<synchronous>, transform_indices = @transform_8, window_bounds = array<i64: 32, 128>}]} {
    %c0 = arith.constant 0 : index
    %c0_0 = arith.constant 0 : index
    %0 = vector.load %arg1[%c0, %c0_0] : memref<32x32xf32, #tpu.memory_space<vmem>>, vector<32x32xf32>
    %c0_1 = arith.constant 0 : index
    %c0_2 = arith.constant 0 : index
    %1 = vector.load %arg2[%c0_1, %c0_2] : memref<32x4xf32, #tpu.memory_space<vmem>>, vector<32x4xf32>
    %c0_3 = arith.constant 0 : index
    %c0_4 = arith.constant 0 : index
    %2 = vector.load %arg3[%c0_3, %c0_4] : memref<4x32xf32, #tpu.memory_space<vmem>>, vector<4x32xf32>
    %cst = arith.constant dense<0.000000e+00> : vector<32x32xf32>
    %3 = tpu.matmul %1, %2, %cst {dimension_numbers = #tpu.dot_dimension_numbers<[1], [0], [0], [1], [0, 0, 1, 1], [], []>} : vector<32x4xf32>, vector<4x32xf32>, vector<32x32xf32> -> vector<32x32xf32>
    %cst_5 = arith.constant dense<0.000000e+00> : vector<32x32xf32>
    %4 = tpu.matmul %0, %3, %cst_5 {dimension_numbers = #tpu.dot_dimension_numbers<[1], [0], [0], [1], [0, 0, 1, 1], [], []>} : vector<32x32xf32>, vector<32x32xf32>, vector<32x32xf32> -> vector<32x32xf32>
    %c0_6 = arith.constant 0 : index
    %c0_7 = arith.constant 0 : index
    %5 = vector.load %arg4[%c0_6, %c0_7] : memref<1x32xf32, #tpu.memory_space<vmem>>, vector<1x32xf32>
    %6 = vector.broadcast %5 : vector<1x32xf32> to vector<32x32xf32>
    %7 = arith.addf %4, %6 : vector<32x32xf32>
    %8 = math.tanh %7 : vector<32x32xf32>
    %c0_8 = arith.constant 0 : index
    %c0_9 = arith.constant 0 : index
    %9 = vector.load %arg5[%c0_8, %c0_9] : memref<32x32xf32, #tpu.memory_space<vmem>>, vector<32x32xf32>
    %cst_10 = arith.constant dense<0.000000e+00> : vector<32x32xf32>
    %10 = tpu.matmul %8, %9, %cst_10 {dimension_numbers = #tpu.dot_dimension_numbers<[1], [0], [0], [1], [0, 0, 1, 1], [], []>} : vector<32x32xf32>, vector<32x32xf32>, vector<32x32xf32> -> vector<32x32xf32>
    %cst_11 = arith.constant dense<0.000000e+00> : vector<32x32xf32>
    %11 = tpu.matmul %0, %10, %cst_11 {dimension_numbers = #tpu.dot_dimension_numbers<[1], [0], [0], [1], [0, 0, 1, 1], [], []>} : vector<32x32xf32>, vector<32x32xf32>, vector<32x32xf32> -> vector<32x32xf32>
    %c0_12 = arith.constant 0 : index
    %c0_13 = arith.constant 0 : index
    %12 = vector.load %arg6[%c0_12, %c0_13] : memref<1x32xf32, #tpu.memory_space<vmem>>, vector<1x32xf32>
    %13 = vector.broadcast %12 : vector<1x32xf32> to vector<32x32xf32>
    %14 = arith.addf %11, %13 : vector<32x32xf32>
    %15 = math.tanh %14 : vector<32x32xf32>
    %c0_14 = arith.constant 0 : index
    %c0_15 = arith.constant 0 : index
    %16 = vector.load %arg7[%c0_14, %c0_15] : memref<32x1xf32, #tpu.memory_space<vmem>>, vector<32x1xf32>
    %cst_16 = arith.constant dense<0.000000e+00> : vector<32x1xf32>
    %17 = tpu.matmul %15, %16, %cst_16 {dimension_numbers = #tpu.dot_dimension_numbers<[1], [0], [0], [1], [0, 0, 1, 1], [], []>} : vector<32x32xf32>, vector<32x1xf32>, vector<32x1xf32> -> vector<32x1xf32>
    %cst_17 = arith.constant dense<0.000000e+00> : vector<32x1xf32>
    %18 = tpu.matmul %0, %17, %cst_17 {dimension_numbers = #tpu.dot_dimension_numbers<[1], [0], [0], [1], [0, 0, 1, 1], [], []>} : vector<32x32xf32>, vector<32x1xf32>, vector<32x1xf32> -> vector<32x1xf32>
    %c0_18 = arith.constant 0 : index
    %c0_19 = arith.constant 0 : index
    %19 = vector.load %arg8[%c0_18, %c0_19] : memref<1x1xf32, #tpu.memory_space<vmem>>, vector<1x1xf32>
    %20 = vector.broadcast %19 : vector<1x1xf32> to vector<32x1xf32>
    %21 = arith.addf %18, %20 : vector<32x1xf32>
    %22 = math.tanh %21 : vector<32x1xf32>
    %cst_20 = arith.constant 0.000000e+00 : f32
    %23 = vector.broadcast %cst_20 : f32 to vector<32x63xf32>
    %24 = tpu.concatenate %8, %15, %22, %23 in 1 : vector<32x32xf32>, vector<32x32xf32>, vector<32x1xf32>, vector<32x63xf32> -> vector<32x128xf32>
    %c0_21 = arith.constant 0 : index
    %c0_22 = arith.constant 0 : index
    %25 = vector.load %arg9[%c0_21, %c0_22] : memref<32x128xf32, #tpu.memory_space<vmem>>, vector<32x128xf32>
    tpu.vector_store %arg9[%c0_21, %c0_22], %24 {strides = array<i32>} : memref<32x128xf32, #tpu.memory_space<vmem>>, vector<32x128xf32>,
    return
  }
  func.func @transform_0(%arg0: i32) -> (i32, i32) {
    %c0_i32 = arith.constant 0 : i32
    %c0_i32_0 = arith.constant 0 : i32
    %c0_i32_1 = arith.constant 0 : i32
    return %c0_i32, %c0_i32_0 : i32, i32
  }
  func.func @transform_1(%arg0: i32) -> (i32, i32) {
    %c0_i32 = arith.constant 0 : i32
    %c0_i32_0 = arith.constant 0 : i32
    %c0_i32_1 = arith.constant 0 : i32
    return %c0_i32, %c0_i32_0 : i32, i32
  }
  func.func @transform_2(%arg0: i32) -> (i32, i32) {
    %c0_i32 = arith.constant 0 : i32
    %c0_i32_0 = arith.constant 0 : i32
    %c0_i32_1 = arith.constant 0 : i32
    return %c0_i32, %c0_i32_0 : i32, i32
  }
  func.func @transform_3(%arg0: i32) -> (i32, i32) {
    %c0_i32 = arith.constant 0 : i32
    %c0_i32_0 = arith.constant 0 : i32
    %c0_i32_1 = arith.constant 0 : i32
    return %c0_i32, %c0_i32_0 : i32, i32
  }
  func.func @transform_4(%arg0: i32) -> (i32, i32) {
    %c0_i32 = arith.constant 0 : i32
    %c0_i32_0 = arith.constant 0 : i32
    %c0_i32_1 = arith.constant 0 : i32
    return %c0_i32, %c0_i32_0 : i32, i32
  }
  func.func @transform_5(%arg0: i32) -> (i32, i32) {
    %c0_i32 = arith.constant 0 : i32
    %c0_i32_0 = arith.constant 0 : i32
    %c0_i32_1 = arith.constant 0 : i32
    return %c0_i32, %c0_i32_0 : i32, i32
  }
  func.func @transform_6(%arg0: i32) -> (i32, i32) {
    %c0_i32 = arith.constant 0 : i32
    %c0_i32_0 = arith.constant 0 : i32
    %c0_i32_1 = arith.constant 0 : i32
    return %c0_i32, %c0_i32_0 : i32, i32
  }
  func.func @transform_7(%arg0: i32) -> (i32, i32) {
    %c0_i32 = arith.constant 0 : i32
    %c0_i32_0 = arith.constant 0 : i32
    %c0_i32_1 = arith.constant 0 : i32
    return %c0_i32, %c0_i32_0 : i32, i32
  }
  func.func @transform_8(%arg0: i32) -> (i32, i32) {
    %c0_i32 = arith.constant 0 : i32
    %c0_i32_0 = arith.constant 0 : i32
    %c0_i32_1 = arith.constant 0 : i32
    return %c0_i32, %c0_i32_0 : i32, i32
  }
}

</mosaic_0001>

<bundles_post_ra>
// kernel: tpu_custom_call.1
= control target key start
LH: loop header
LB: loop body
LE: loop exit
PB: predicated region body
PF: predicated region fallthrough
CT: control target
= control target key end

     0   :  { %s634_s0 = inlined_call_operand.vmem [shape: f32[32,32], index: 0, kind: input, shape index: {}]   ;;  %s635_s1 = inlined_call_operand.vmem [shape: f32[32,4], index: 1, kind: input, shape index: {}]   ;;  %s636_s2 = inlined_call_operand.vmem [shape: f32[4,32], index: 2, kind: input, shape index: {}]   ;;  %s637_s3 = inlined_call_operand.vmem [shape: f32[1,32], index: 3, kind: input, shape index: {}]   ;;  %s638_s4 = inlined_call_operand.vmem [shape: f32[32,32], index: 4, kind: input, shape index: {}]   ;;  %s639_s5 = inlined_call_operand.vmem [shape: f32[1,32], index: 5, kind: input, shape index: {}]   ;;  %s640_s6 = inlined_call_operand.vmem [shape: f32[32,1], index: 6, kind: input, shape index: {}]   ;;  %s641_s7 = inlined_call_operand.<no memory space> [shape: f32[1,1], index: 7, kind: input, shape index: {}]   ;;  %s642_s8 = inlined_call_operand.hbm [shape: f32[32,128], index: 8, kind: output, shape index: {}]  }
   0x1   :  { %v13_v0 = vstv %s641_s7 }
   0x2   :  { %14 = vst [vmem:[#allocation2] sm:$0x1] %v13_v0 }
   0x3   :  { %v40_v1 = vld [vmem:[%s636_s2] sm:$0xf]  ;;  %vm54_vm0 = vcmask 1043456   ;;  %v37_v2 = vld [vmem:[%s635_s1 + $0x8] sm:$0xff]  ;;  %vm41_vm1 = vcmask 31744  }
   0x4   :  { %390 = vmatpush.msk.msra.mxu3 %vm54_vm0, %v40_v1  ;;  %365 = vmatpush.msk.msra.mxu0 %vm54_vm0, %v40_v1  ;;  %v36_v3 = vld [vmem:[%s635_s1] sm:$0xff] }
   0x5   :  { %367 = vmatmul.msk.f32.vlgmr.msra.gmra.mxu3 %vm41_vm1, %v37_v2  ;;  %366 = vmatmul.msk.f32.vlgmr.msra.gmra.mxu0 %vm41_vm1, %v36_v3 }
   0x6   :  { %15 = vsyncpa [#allocation4], 0  ;;  %v38_v4 = vld [vmem:[%s635_s1 + $0x10] sm:$0xff]  ;;  %v39_v5 = vld [vmem:[%s635_s1 + $0x18] sm:$0xff]  ;;  %vm91_vm2 = vcmask 261120   ;;  %s453_s15 = smov 32  }
   0x7   :  { %v524_v10 = vld [vmem:[%s634_s0] sm:$0xff]  ;;  %v529_v11 = vld [vmem:[%s634_s0 + $0x10] sm:$0xff]  ;;  %v538_v12 = vld [vmem:[%s634_s0 + $0x8] sm:$0xff]  ;;  %vm333_vm3 = vcmask 523264   ;;  %vm338_vm4 = vcmask 531456   ;;  %s353_s1 = sshll.u32 %s642_s8, 4  ;;  %s354_s1 = int_to_ptr.hbm [resolvable:$true] %s353_s1 }
   0x8   :  { %v543_v13 = vld [vmem:[%s634_s0 + $0x18] sm:$0xff]  ;;  %v139_v15 = vld [vmem:[%s638_s4 + $0x10] sm:$0xff]  ;;  %v138_v16 = vld [vmem:[%s638_s4 + $0x8] sm:$0xff]  ;;  %s456_s19 = smov 128   ;;  %s457_s20 = smov 8  }
   0x9   :  { %v140_v14 = vld [vmem:[%s638_s4 + $0x18] sm:$0xff]  ;;  %v137_v17 = vld [vmem:[%s638_s4] sm:$0xff]  ;;  %v221_v36 = vld [vmem:[%s640_s6 + $0x10] sm:$0xff] }
   0xa   :  { %v400_v18 = vld [vmem:[%s637_s3] ss:$0 sm:$0xff]  ;;  %v222_v35 = vld [vmem:[%s640_s6 + $0x18] sm:$0xff]  ;;  %v220_v37 = vld [vmem:[%s640_s6 + $0x8] sm:$0xff] }
   0xb   :  { %247 = vmatpush.msrb.mxu0 %v222_v35  ;;  %v219_v38 = vld [vmem:[%s640_s6] sm:$0xff]  ;;  %s455_s6 = smov [#allocation3]  }
   0xc   :  { %v401_v39 = vld [vmem:[%s639_s5] ss:$0 sm:$0xff]  ;;  %s454_s5 = smov 64   ;;  %s351_s16 = sshll.u32 %s455_s6, 4  ;;  %s352_s16 = int_to_ptr.vmem [resolvable:$true] %s351_s16 }
   0xd   :  { %368 = vmatmul.msk.f32.gmra.mxu3 %vm41_vm1, %v38_v4  ;;  %248 = vmatpush.msrb.mxu0 %v221_v36  ;;  %v402_v56 = vld [vmem:[#allocation2] ss:$0 sm:$0xff] }
   0xf   :  { %249 = vmatpush.msrb.mxu0 %v220_v37 }
  0x11   :  { %250 = vmatpush.msrb.mxu0 %v219_v38 }
  0x15   :  { %369 = vmatmul.msk.f32.gmra.mxu3 %vm41_vm1, %v39_v5 }
  0x82   :  { %v75_v9 = vpop.f32.mrf.mxu0 }
  0x88   :  { %v78_v6 = vpop.f32.mrf.mxu3 }
  0x90   :  { %v81_v7 = vpop.f32.mrf.mxu3 }
  0x98   :  { %v84_v8 = vpop.f32.mrf.mxu3 }
  0x99   :  { %116 = vmatpush.msra.mxu1 %v84_v8  ;;  %391 = vmatpush.msra.mxu2 %v84_v8 }
  0x9b   :  { %117 = vmatpush.msra.mxu1 %v81_v7  ;;  %392 = vmatpush.msra.mxu2 %v81_v7 }
  0x9d   :  { %118 = vmatpush.msra.mxu1 %v78_v6  ;;  %393 = vmatpush.msra.mxu2 %v78_v6 }
  0x9f   :  { %119 = vmatpush.msra.mxu1 %v75_v9  ;;  %394 = vmatpush.msra.mxu2 %v75_v9 }
  0xa0   :  { %370 = vmatmul.msk.f32.vlgmr.msra.gmra.mxu1 %vm91_vm2, %v524_v10  ;;  %372 = vmatmul.msk.f32.vlgmr.msra.gmra.mxu2 %vm91_vm2, %v529_v11 }
  0xa1   :  { %165 = vmatpush.msrb.mxu2 %v140_v14 }
  0xa3   :  { %166 = vmatpush.msrb.mxu2 %v139_v15 }
  0xa5   :  { %167 = vmatpush.msrb.mxu2 %v138_v16 }
  0xa7   :  { %168 = vmatpush.msrb.mxu2 %v137_v17 }
  0xa8   :  { %371 = vmatmul.msk.f32.gmra.mxu1 %vm91_vm2, %v538_v12  ;;  %373 = vmatmul.msk.f32.gmra.mxu2 %vm91_vm2, %v543_v13 }
 0x11d   :  { %v121_v19 = vpop.f32.mrf.mxu1 }
 0x11e   :  { %v122_v20 = vadd.f32 %v400_v18, %v121_v19 }
 0x120   :  { %403 = vtanh.f32 %v122_v20 }
 0x123   :  { %v127_v22 = vpop.f32.mrf.mxu2 }
 0x124   :  { %v128_v25 = vadd.f32 %v400_v18, %v127_v22 }
 0x125   :  { %v124_v21 = vpop.f32.mrf.mxu1 }
 0x126   :  { %v564_v23 = vpop.eup %403  ;;  %v125_v24 = vadd.f32 %v400_v18, %v124_v21 }
 0x127   :  { %374 = vmatmul.msk.f32.vlgmr.msrb.gmra.mxu2 %vm91_vm2, %v564_v23 }
 0x128   :  { %405 = vtanh.f32 %v125_v24 }
 0x129   :  { %407 = vtanh.f32 %v128_v25 }
 0x12b   :  { %v130_v27 = vpop.f32.mrf.mxu2 }
 0x12c   :  { %v131_v28 = vadd.f32 %v400_v18, %v130_v27 }
 0x12e   :  { %v568_v26 = vpop.eup %405  ;;  %409 = vtanh.f32 %v131_v28 }
 0x12f   :  { %375 = vmatmul.msk.f32.gmra.mxu2 %vm91_vm2, %v568_v26  ;;  %v572_v29 = vpop.eup %407 }
 0x134   :  { %v576_v30 = vpop.eup %409 }
 0x137   :  { %376 = vmatmul.msk.f32.gmra.mxu2 %vm91_vm2, %v572_v29 }
 0x13f   :  { %377 = vmatmul.msk.f32.gmra.mxu2 %vm91_vm2, %v576_v30 }
 0x1aa   :  { %v170_v31 = vpop.f32.mrf.mxu2 }
 0x1b2   :  { %v173_v32 = vpop.f32.mrf.mxu2 }
 0x1ba   :  { %v176_v33 = vpop.f32.mrf.mxu2 }
 0x1c2   :  { %v179_v34 = vpop.f32.mrf.mxu2 }
 0x1c3   :  { %198 = vmatpush.msrb.mxu3 %v179_v34 }
 0x1c5   :  { %199 = vmatpush.msrb.mxu3 %v176_v33 }
 0x1c7   :  { %200 = vmatpush.msrb.mxu3 %v173_v32 }
 0x1c9   :  { %201 = vmatpush.msrb.mxu3 %v170_v31 }
 0x1ca   :  { %378 = vmatmul.msk.f32.vlgmr.msrb.gmra.mxu3 %vm91_vm2, %v524_v10 }
 0x1d2   :  { %379 = vmatmul.msk.f32.gmra.mxu3 %vm91_vm2, %v538_v12 }
 0x1da   :  { %380 = vmatmul.msk.f32.gmra.mxu3 %vm91_vm2, %v529_v11 }
 0x1e2   :  { %381 = vmatmul.msk.f32.gmra.mxu3 %vm91_vm2, %v543_v13 }
 0x24d   :  { %v203_v40 = vpop.f32.mrf.mxu3 }
 0x24e   :  { %v204_v41 = vadd.f32 %v401_v39, %v203_v40 }
 0x250   :  { %411 = vtanh.f32 %v204_v41 }
 0x255   :  { %v206_v42 = vpop.f32.mrf.mxu3 }
 0x256   :  { %v412_v43 = vpop.eup %411  ;;  %v207_v44 = vadd.f32 %v401_v39, %v206_v42 }
 0x257   :  { %301 = vrot.lane.b32.xlu0 %v412_v43, %s453_s15  ;;  %382 = vmatmul.msk.f32.vlgmr.msrb.gmra.mxu0 %vm91_vm2, %v412_v43 }
 0x258   :  { %413 = vtanh.f32 %v207_v44 }
 0x25d   :  { %v209_v45 = vpop.f32.mrf.mxu3 }
 0x25e   :  { %v414_v46 = vpop.eup %413  ;;  %v210_v47 = vadd.f32 %v401_v39, %v209_v45 }
 0x25f   :  { %303 = vrot.lane.b32.xlu0 %v414_v46, %s453_s15  ;;  %383 = vmatmul.msk.f32.gmra.mxu0 %vm91_vm2, %v414_v46 }
 0x260   :  { %415 = vtanh.f32 %v210_v47 }
 0x265   :  { %v212_v48 = vpop.f32.mrf.mxu3 }
 0x266   :  { %v416_v49 = vpop.eup %415  ;;  %v213_v50 = vadd.f32 %v401_v39, %v212_v48 }
 0x267   :  { %305 = vrot.lane.b32.xlu1 %v416_v49, %s453_s15  ;;  %384 = vmatmul.msk.f32.gmra.mxu0 %vm91_vm2, %v416_v49 }
 0x268   :  { %417 = vtanh.f32 %v213_v50 }
 0x26e   :  { %v418_v51 = vpop.eup %417 }
 0x26f   :  { %307 = vrot.lane.b32.xlu1 %v418_v51, %s453_s15  ;;  %385 = vmatmul.msk.f32.gmra.mxu0 %vm91_vm2, %v418_v51 }
 0x2c9   :  { %v302_v5 = vpop.permute.xlu0 %301 }
 0x2ca   :  { %v329_v6 = vsel %vm91_vm2, %v564_v23, %v302_v5 }
 0x2d4   :  { %v252_v52 = vpop.f32.mrf.mxu0 }
 0x2d9   :  { %v306_v15 = vpop.permute.xlu1 %305 }
 0x2da   :  { %v331_v16 = vsel %vm91_vm2, %v572_v29, %v306_v15 }
 0x2dc   :  { %v255_v53 = vpop.f32.mrf.mxu0 }
 0x2e1   :  { %v308_v17 = vpop.permute.xlu1 %307 }
 0x2e2   :  { %v332_v21 = vsel %vm91_vm2, %v576_v30, %v308_v17 }
 0x2e4   :  { %v258_v54 = vpop.f32.mrf.mxu0 }
 0x2ec   :  { %v261_v55 = vpop.f32.mrf.mxu0 }
 0x2ed   :  { %280 = vmatpush.msrb.mxu1 %v261_v55 }
 0x2ef   :  { %281 = vmatpush.msrb.mxu1 %v258_v54 }
 0x2f1   :  { %282 = vmatpush.msrb.mxu1 %v255_v53 }
 0x2f3   :  { %283 = vmatpush.msrb.mxu1 %v252_v52 }
 0x2f4   :  { %386 = vmatmul.msk.f32.vlgmr.msrb.gmra.mxu1 %vm91_vm2, %v524_v10  ;;  %v304_v10 = vpop.permute.xlu0 %303 }
 0x2fc   :  { %387 = vmatmul.msk.f32.gmra.mxu1 %vm91_vm2, %v538_v12 }
 0x304   :  { %388 = vmatmul.msk.f32.gmra.mxu1 %vm91_vm2, %v529_v11  ;;  %v330_v11 = vsel %vm91_vm2, %v568_v26, %v304_v10 }
 0x30c   :  { %389 = vmatmul.msk.f32.gmra.mxu1 %vm91_vm2, %v543_v13 }
 0x371   :  { %v285_v57 = vpop.f32.mrf.mxu1 }
 0x372   :  { %v286_v58 = vadd.f32 %v402_v56, %v285_v57 }
 0x374   :  { %419 = vtanh.f32 %v286_v58 }
 0x379   :  { %v288_v59 = vpop.f32.mrf.mxu1 }
 0x37a   :  { %v420_v60 = vpop.eup %419  ;;  %v289_v61 = vadd.f32 %v402_v56, %v288_v59 }
 0x37b   :  { %317 = vrot.lane.b32.xlu2 %v420_v60, %s454_s5 }
 0x37c   :  { %421 = vtanh.f32 %v289_v61 }
 0x381   :  { %v291_v62 = vpop.f32.mrf.mxu1 }
 0x382   :  { %v422_v63 = vpop.eup %421  ;;  %v292_v0 = vadd.f32 %v402_v56, %v291_v62 }
 0x383   :  { %319 = vrot.lane.b32.xlu2 %v422_v63, %s454_s5 }
 0x384   :  { %423 = vtanh.f32 %v292_v0 }
 0x389   :  { %v294_v1 = vpop.f32.mrf.mxu1 }
 0x38a   :  { %v424_v2 = vpop.eup %423  ;;  %v295_v3 = vadd.f32 %v402_v56, %v294_v1 }
 0x38b   :  { %321 = vrot.lane.b32.xlu0 %v424_v2, %s454_s5 }
 0x38c   :  { %425 = vtanh.f32 %v295_v3 }
 0x392   :  { %v426_v4 = vpop.eup %425 }
 0x393   :  { %323 = vrot.lane.b32.xlu1 %v426_v4, %s454_s5 }
 0x3d5   :  { %v318_v7 = vpop.permute.xlu2 %317 }
 0x3d6   :  { %v334_v8 = vsel %vm333_vm3, %v329_v6, %v318_v7 }
 0x3d7   :  { %v339_v9 = vsel %vm338_vm4, %v334_v8, 0.0 }
 0x3d8   :  { %343 = vst [vmem:[#allocation3] sm:$0xff] %v339_v9 }
 0x3dd   :  { %v320_v12 = vpop.permute.xlu2 %319 }
 0x3de   :  { %v335_v13 = vsel %vm333_vm3, %v330_v11, %v320_v12 }
 0x3df   :  { %v340_v14 = vsel %vm338_vm4, %v335_v13, 0.0 }
 0x3e0   :  { %344 = vst [vmem:[#allocation3 + $0x8] sm:$0xff] %v340_v14 }
 0x3fd   :  { %v322_v18 = vpop.permute.xlu0 %321 }
 0x3fe   :  { %v336_v19 = vsel %vm333_vm3, %v331_v16, %v322_v18 }
 0x3ff   :  { %v341_v20 = vsel %vm338_vm4, %v336_v19, 0.0 }
 0x400   :  { %345 = vst [vmem:[#allocation3 + $0x10] sm:$0xff] %v341_v20 }
 0x405   :  { %v324_v22 = vpop.permute.xlu1 %323 }
 0x406   :  { %v337_v23 = vsel %vm333_vm3, %v332_v21, %v324_v22 }
 0x407   :  { %v342_v24 = vsel %vm338_vm4, %v337_v23, 0.0 }
 0x408   :  { %346 = vst [vmem:[#allocation3 + $0x18] sm:$0xff] %v342_v24 }
 0x409   :  { %359 = dma.vmem_to_hbm [thread:$0]  %s352_s16, 512, %s354_s1, [#allocation4], %s456_s19, %s456_s19, %s457_s20  }
 0x40a   :  { %451 = dma.done.wait [#allocation4], 512  }
 0x40b   :  { %452 = vsyncadd [#allocation4], 4294966784 }
 0x40c   :  { %364 = vsyncpa [#allocation4], 1 }

</bundles_post_ra>
